<compile_context>
chip_gen: v6e
topology: v6e:2x2x1
jax: 0.10.0
libtpu: 0.0.40
codegen_flags: <defaults>
</compile_context>

<pallas_src>
import math

import jax
import jax.numpy as jnp
from jax import lax
from jax.experimental import pallas as pl
from jax.experimental.pallas import tpu as pltpu

# ---- ArcFace margin constants (s=64, m=0.5), baked at trace time ----
ARC_S = 64.0
ARC_M = 0.5
COS_M = math.cos(ARC_M)
SIN_M = math.sin(ARC_M)
NORM_EPS = 1e-12                     # torch.nn.functional.normalize eps
_NORM_EPS_SQ = NORM_EPS * NORM_EPS   # rsqrt(max(sumsq, eps^2)) == 1/max(||x||, eps)


def _l2_normalize_f32(x):
    """F.normalize(x, dim=-1): x / max(||x||_2, eps), via a single rsqrt."""
    x = x.astype(jnp.float32)
    ssq = jnp.sum(x * x, axis=-1, keepdims=True)
    return x * lax.rsqrt(jnp.maximum(ssq, _NORM_EPS_SQ))


def _pfc_kernel(tile_flags_ref, labels_ref, emb_ref, w_ref, winv_ref, out_ref):
    """One (batch-tile, class-tile) block of the PartialFC_V2 forward.

    tile_flags_ref: (num_b_tiles*num_c_tiles,) int32 SMEM (scalar prefetch):
                    1 iff this block contains a target label.
    labels_ref:     (tile_b, 1)      int32 VMEM
    emb_ref:        (tile_b, D)      compute-dtype VMEM, already L2-normalized
    w_ref:          (tile_c, D)      raw (unnormalized) weight tile, compute dtype
    winv_ref:       (1, tile_c)      f32 per-class inverse norms (precomputed)
    out_ref:        (tile_b, tile_c) f32 logits tile
    """
    bi = pl.program_id(0)
    ci = pl.program_id(1)
    nc = pl.num_programs(1)

    # logits = norm_emb @ w.T * inv_norm(w)  -> (tile_b, tile_c), f32 accumulation.
    # Column scaling after the matmul is D/tile_b times cheaper than normalizing
    # the (tile_c, D) weight tile and avoids any f32 weight copy in VMEM.
    raw = lax.dot_general(
        emb_ref[...], w_ref[...],
        dimension_numbers=(((1,), (1,)), ((), ())),
        preferred_element_type=jnp.float32,
    )
    logits = jnp.clip(raw * winv_ref[...], -1.0, 1.0)

    has_target = tile_flags_ref[bi * nc + ci] > 0

    # Fast path: no label falls in this block -> no margin math at all.
    @pl.when(jnp.logical_not(has_target))
    def _():
        out_ref[...] = logits * ARC_S

    # Slow path: apply the ArcFace margin to the target column(s) of this block.
    @pl.when(has_target)
    def _():
        lbl = labels_ref[...]                                   # (tile_b, 1) int32
        b, tc = logits.shape
        col = lax.broadcasted_iota(jnp.int32, (b, tc), 1)       # local column index
        local_lbl = lbl - ci * tc
        is_target = jnp.logical_and(col == local_lbl, lbl >= 0)
        # cos(theta + m) = cos*cos_m - sin*sin_m; exact because logits in [-1, 1].
        sin_theta = jnp.sqrt(jnp.clip(1.0 - logits * logits, 0.0, 1.0))
        target = logits * COS_M - sin_theta * SIN_M
        out_ref[...] = jnp.where(is_target, target, logits) * ARC_S


def _round_up(x, m):
    return ((x + m - 1) // m) * m


def _chip_info():
    """Best-effort generation / VMEM query with conservative fallbacks."""
    vmem = 64 * 1024 * 1024                       # conservative: v7x per-TC VMEM
    try:
        vmem = int(pltpu.get_tpu_info().vmem_capacity_bytes)
    except Exception:
        pass
    kind = ""
    try:
        kind = jax.devices()[0].device_kind.lower()
    except Exception:
        pass
    is_v5e = ("v5e" in kind) or ("v5 lite" in kind) or ("v5lite" in kind)
    two_tc = any(t in kind for t in ("v7", "v4", "v5p"))
    return {"vmem_bytes": vmem, "is_v5e": is_v5e, "two_tc": two_tc}


def _pick_tiles(batch, dim, num_classes, w_itemsize, emb_itemsize):
    """Pick (tile_b, tile_c) so the double-buffered pipeline *and* in-kernel
    temporaries fit a generation-aware VMEM budget."""
    info = _chip_info()
    budget = int(info["vmem_bytes"] * 0.7)        # headroom for Mosaic internals

    # Batch tile: fill the MXU M dimension (256 rows on v6e/v7x, 128 on v5e).
    max_tile_b = 128 if info["is_v5e"] else 256
    tile_b = batch if batch <= max_tile_b else max_tile_b
    num_b_tiles = _round_up(batch, tile_b) // tile_b

    # Fixed (class-tile independent) VMEM: double-buffered emb + labels block.
    fixed = (2 * tile_b * dim * emb_itemsize      # embeddings
             + 2 * tile_b * 128 * 4)              # labels block (lane-padded)
    # Per-class-column VMEM: weight + output double buffers + ~4 in-kernel
    # (tile_b, tile_c) f32 temporaries (raw/logits/sin/select) + inv-norm row.
    per_col = (2 * dim * w_itemsize
               + 2 * tile_b * 4
               + 4 * tile_b * 4
               + 2 * 8 * 4)
    tile_c = (budget - fixed) // per_col
    tile_c = max(128, (tile_c // 128) * 128)
    tile_c = min(tile_c, 4096)                    # amortize ~0.35us/step overhead

    # Keep >= 2 class steps only where a second TensorCore can use them and the
    # batch axis doesn't already provide parallel grid steps.
    if info["two_tc"] and num_b_tiles == 1 and num_classes >= 256:
        half = _round_up((num_classes + 1) // 2, 128)
        tile_c = min(tile_c, max(128, half))
    tile_c = min(tile_c, _round_up(num_classes, 128))
    return tile_b, tile_c, budget, info


def partial_fc_v2_forward(embeddings, labels, weight, *, tile_b=None, tile_c=None,
                          compute_dtype=jnp.bfloat16):
    """Pallas-backed PartialFC_V2.forward (sample_rate=1.0, fp16=False, is_train=True).

    embeddings: (B, D) float
    labels:     (B,)   int    (label < 0 or >= C gets no margin)
    weight:     (C, D) float
    compute_dtype: MXU input dtype (embeddings + weight are cast to it).  bf16 is
        native on v5e/v6e/v7x and halves the dominant HBM weight read; the margin
        math and accumulation stay f32.  Pass jnp.float32 for exact fp32-PyTorch
        parity (slower, 2x HBM traffic).
    Returns (logits (B, C) float32, labels).
    """
    B, D = embeddings.shape
    C, D2 = weight.shape
    assert D == D2

    emb_itemsize = jnp.dtype(compute_dtype).itemsize
    w_itemsize = emb_itemsize                     # weight cast to compute_dtype below

    auto_tb, auto_tc, budget, info = _pick_tiles(B, D, C, w_itemsize, emb_itemsize)
    if tile_b is None:
        tile_b = auto_tb
    if tile_c is None:
        tile_c = auto_tc
    assert tile_c % 128 == 0

    # Pad batch / class axes so they divide the tiles.  Padded embedding rows and
    # weight rows are zero: they normalize to zero logits and get sliced off.
    B_pad = B if tile_b >= B else _round_up(B, tile_b)
    if tile_b >= B:
        tile_b = B
    assert tile_b == B_pad or tile_b % 8 == 0
    C_pad = _round_up(C, tile_c)
    num_b_tiles = B_pad // tile_b
    num_c_tiles = C_pad // tile_c

    # Per-class inverse norms precomputed once in f32 (replaces the per-tile
    # in-kernel weight normalization).
    w_f32 = weight.astype(jnp.float32)
    w_ssq = jnp.sum(w_f32 * w_f32, axis=-1)                      # (C,)
    w_inv = lax.rsqrt(jnp.maximum(w_ssq, _NORM_EPS_SQ))
    if C_pad != C:
        weight = jnp.pad(weight, ((0, C_pad - C), (0, 0)))
        w_inv = jnp.pad(w_inv, (0, C_pad - C))
    w_inv = w_inv.reshape(1, C_pad)
    w_mxu = weight.astype(compute_dtype)

    # Embedding normalization hoisted out of the kernel: done once, not per tile.
    emb_n = _l2_normalize_f32(embeddings).astype(compute_dtype)
    labels_i32 = labels.astype(jnp.int32)
    if B_pad != B:
        emb_n = jnp.pad(emb_n, ((0, B_pad - B), (0, 0)))
        labels_i32 = jnp.pad(labels_i32, (0, B_pad - B), constant_values=-1)
    labels_2d = labels_i32.reshape(B_pad, 1)

    # Per-(batch-tile, class-tile) "contains a target label" flags, flattened to
    # 1D for SMEM scalar prefetch; lets the kernel skip the margin epilogue on
    # the vast majority of blocks.
    # NOTE: labels in [C, C_pad) would place a margin on a padded column inside a
    # flagged tile; harmless since padded columns are sliced off below.
    valid = jnp.logical_and(labels_i32 >= 0, labels_i32 < C)
    b_tile_idx = jnp.arange(B_pad, dtype=jnp.int32) // tile_b
    c_tile_idx = jnp.where(valid, labels_i32 // tile_c, 0)
    flat_idx = b_tile_idx * num_c_tiles + c_tile_idx
    tile_flags = jnp.zeros((num_b_tiles * num_c_tiles,), jnp.int32).at[flat_idx].max(
        valid.astype(jnp.int32))

    # VMEM limit covering the chosen tiles *including* in-kernel temporaries.
    est_vmem = (2 * tile_b * D * emb_itemsize + 2 * tile_b * 128 * 4
                + tile_c * (2 * D * w_itemsize + 2 * tile_b * 4
                            + 4 * tile_b * 4 + 64))
    vmem_limit = int(min(info["vmem_bytes"], max(budget, est_vmem + (8 << 20))))

    cost = pl.CostEstimate(
        flops=2 * B_pad * D * C_pad,
        transcendentals=0,
        bytes_accessed=(w_mxu.size * w_itemsize + emb_n.size * emb_itemsize
                        + B_pad * C_pad * 4 + labels_2d.size * 4 + w_inv.size * 4),
    )

    logits = pl.pallas_call(
        _pfc_kernel,
        out_shape=jax.ShapeDtypeStruct((B_pad, C_pad), jnp.float32),
        grid_spec=pltpu.PrefetchScalarGridSpec(
            num_scalar_prefetch=1,
            grid=(num_b_tiles, num_c_tiles),        # class axis innermost: emb/labels
            in_specs=[                              # blocks stay resident per batch tile
                pl.BlockSpec((tile_b, 1), lambda bi, ci, flags: (bi, 0)),   # labels
                pl.BlockSpec((tile_b, D), lambda bi, ci, flags: (bi, 0)),   # norm emb
                pl.BlockSpec((tile_c, D), lambda bi, ci, flags: (ci, 0)),   # weight tile
                pl.BlockSpec((1, tile_c), lambda bi, ci, flags: (0, ci)),   # inv norms
            ],
            out_specs=pl.BlockSpec((tile_b, tile_c), lambda bi, ci, flags: (bi, ci)),
        ),
        compiler_params=pltpu.CompilerParams(
            dimension_semantics=("parallel", "parallel"),
            vmem_limit_bytes=vmem_limit,
        ),
        cost_estimate=cost,
    )(tile_flags, labels_2d, emb_n, w_mxu, w_inv)

    if C_pad != C or B_pad != B:
        logits = logits[:B, :C]
    return logits, labels


def _reference_forward(embeddings, labels, weight, compute_dtype=jnp.bfloat16):
    """Pure-JAX reference with the same numerical choices as the kernel
    (compute_dtype MXU inputs, f32 accumulation, post-matmul column scaling)."""
    e = _l2_normalize_f32(embeddings).astype(compute_dtype)
    w = weight.astype(compute_dtype)
    w_f32 = weight.astype(jnp.float32)
    inv = lax.rsqrt(jnp.maximum(jnp.sum(w_f32 * w_f32, axis=-1), _NORM_EPS_SQ))
    raw = lax.dot_general(e, w, dimension_numbers=(((1,), (1,)), ((), ())),
                          preferred_element_type=jnp.float32)
    logits = jnp.clip(raw * inv[None, :], -1.0, 1.0)
    B, C = logits.shape
    col = jnp.arange(C, dtype=jnp.int32)[None, :]
    lbl = labels.astype(jnp.int32)[:, None]
    is_target = (col == lbl) & (lbl >= 0)
    sin_theta = jnp.sqrt(jnp.clip(1.0 - logits * logits, 0.0, 1.0))
    target = logits * COS_M - sin_theta * SIN_M
    return jnp.where(is_target, target, logits) * ARC_S


if __name__ == "__main__":
    # Small, deterministic shapes consistent with the module
    # (embedding_size=128, num_classes=512, batch=8, sample_rate=1.0, fp16=False).
    # NOTE: real workloads should use B >= 128/256 and D a multiple of 128 so the
    # MXU M/K dimensions are actually filled; these demo shapes are tiny on purpose.
    B, D, C = 8, 128, 512
    key = jax.random.PRNGKey(0)
    k_emb, k_w, k_lbl = jax.random.split(key, 3)

    embeddings = jax.random.normal(k_emb, (B, D), dtype=jnp.float32)
    # torch.normal(0, 0.01, (num_classes, embedding_size))
    weight = 0.01 * jax.random.normal(k_w, (C, D), dtype=jnp.float32)
    labels = jax.random.randint(k_lbl, (B,), 0, C, dtype=jnp.int32)
    labels = labels.at[0].set(-1)   # one "ignored" row exercises the margin mask

    logits, out_labels = partial_fc_v2_forward(embeddings, labels, weight)
    logits = jax.block_until_ready(logits)

    ref = _reference_forward(embeddings, labels, weight)
    assert logits.shape == (B, C)
    assert bool(jnp.all(jnp.isfinite(logits)))
    # Kernel vs matched-numerics reference (bf16 MXU inputs, f32 accumulation).
    assert jnp.allclose(logits, ref, atol=2e-2, rtol=2e-3), float(
        jnp.max(jnp.abs(logits - ref)))

    # Exact fp32-PyTorch parity path (compute_dtype=f32) vs full-f32 reference.
    logits_f32, _ = partial_fc_v2_forward(embeddings, labels, weight,
                                          compute_dtype=jnp.float32)
    logits_f32 = jax.block_until_ready(logits_f32)
    ref_f32 = _reference_forward(embeddings, labels, weight,
                                 compute_dtype=jnp.float32)
    assert jnp.allclose(logits_f32, ref_f32, atol=1e-2, rtol=1e-3), float(
        jnp.max(jnp.abs(logits_f32 - ref_f32)))

    print("KERNEL_OK")
</pallas_src>

<mosaic_0001>
module attributes {stable_mosaic.version = 11 : i64} {
  func.func @_pfc_kernel(%arg0: i32, %arg1: i32, %arg2: memref<1xi32, #tpu.memory_space<smem>>, %arg3: memref<8x1xi32, #tpu.memory_space<vmem>>, %arg4: memref<8x128xbf16, #tpu.memory_space<vmem>>, %arg5: memref<512x128xbf16, #tpu.memory_space<vmem>>, %arg6: memref<1x512xf32, #tpu.memory_space<vmem>>, %arg7: memref<8x512xf32, #tpu.memory_space<vmem>>) attributes {dimension_semantics = [#tpu.dimension_semantics<parallel>, #tpu.dimension_semantics<parallel>], iteration_bounds = array<i64: 1, 1>, scalar_prefetch = 1 : i64, scratch_operands = 0 : i64, tpu.core_type = #tpu.core_type<tc>, window_params = [{transform_indices = @transform_0, window_bounds = array<i64: 8, 1>}, {transform_indices = @transform_1, window_bounds = array<i64: 8, 128>}, {transform_indices = @transform_2, window_bounds = array<i64: 512, 128>}, {transform_indices = @transform_3, window_bounds = array<i64: 1, 512>}, {transform_indices = @transform_4, window_bounds = array<i64: 8, 512>}]} {
    %c0 = arith.constant 0 : index
    %c0_0 = arith.constant 0 : index
    %0 = vector.load %arg4[%c0, %c0_0] : memref<8x128xbf16, #tpu.memory_space<vmem>>, vector<8x128xbf16>
    %c0_1 = arith.constant 0 : index
    %c0_2 = arith.constant 0 : index
    %1 = vector.load %arg5[%c0_1, %c0_2] : memref<512x128xbf16, #tpu.memory_space<vmem>>, vector<512x128xbf16>
    %cst = arith.constant dense<0.000000e+00> : vector<8x512xf32>
    %2 = tpu.matmul %0, %1, %cst {dimension_numbers = #tpu.dot_dimension_numbers<[1], [1], [0], [0], [0, 0, 1, 0], [], []>} : vector<8x128xbf16>, vector<512x128xbf16>, vector<8x512xf32> -> vector<8x512xf32>
    %c0_3 = arith.constant 0 : index
    %c0_4 = arith.constant 0 : index
    %3 = vector.load %arg6[%c0_3, %c0_4] : memref<1x512xf32, #tpu.memory_space<vmem>>, vector<1x512xf32>
    %4 = vector.broadcast %3 : vector<1x512xf32> to vector<8x512xf32>
    %5 = arith.mulf %2, %4 : vector<8x512xf32>
    %cst_5 = arith.constant -1.000000e+00 : f32
    %cst_6 = arith.constant 1.000000e+00 : f32
    %6 = vector.broadcast %cst_5 : f32 to vector<8x512xf32>
    %7 = arith.maximumf %6, %5 : vector<8x512xf32>
    %8 = vector.broadcast %cst_6 : f32 to vector<8x512xf32>
    %9 = arith.minimumf %8, %7 : vector<8x512xf32>
    %c1_i32 = arith.constant 1 : i32
    %10 = arith.muli %arg0, %c1_i32 : i32
    %11 = arith.addi %10, %arg1 : i32
    %12 = arith.index_cast %11 : i32 to index
    %13 = memref.load %arg2[%12] : memref<1xi32, #tpu.memory_space<smem>>
    %c0_i32 = arith.constant 0 : i32
    %14 = arith.cmpi sgt, %13, %c0_i32 : i32
    %true = arith.constant true
    %15 = arith.xori %14, %true : i1
    %16 = arith.extui %15 : i1 to i32
    %c0_i32_7 = arith.constant 0 : i32
    %17 = arith.cmpi ne, %16, %c0_i32_7 : i32
    scf.if %17 {
      %cst_9 = arith.constant 6.400000e+01 : f32
      %20 = vector.broadcast %cst_9 : f32 to vector<8x512xf32>
      %21 = arith.mulf %9, %20 : vector<8x512xf32>
      %c0_10 = arith.constant 0 : index
      %c0_11 = arith.constant 0 : index
      %22 = vector.load %arg7[%c0_10, %c0_11] : memref<8x512xf32, #tpu.memory_space<vmem>>, vector<8x512xf32>
      tpu.vector_store %arg7[%c0_10, %c0_11], %21 {strides = array<i32>} : memref<8x512xf32, #tpu.memory_space<vmem>>, vector<8x512xf32>,
    } else {
    }
    %18 = arith.extui %14 : i1 to i32
    %c0_i32_8 = arith.constant 0 : i32
    %19 = arith.cmpi ne, %18, %c0_i32_8 : i32
    scf.if %19 {
      %c0_9 = arith.constant 0 : index
      %c0_10 = arith.constant 0 : index
      %20 = vector.load %arg3[%c0_9, %c0_10] : memref<8x1xi32, #tpu.memory_space<vmem>>, vector<8x1xi32>
      %21 = tpu.iota {dimensions = array<i32: 1>} : vector<8x512xi32>
      %c512_i32 = arith.constant 512 : i32
      %22 = arith.muli %arg1, %c512_i32 : i32
      %23 = vector.broadcast %22 : i32 to vector<8x1xi32>
      %24 = arith.subi %20, %23 : vector<8x1xi32>
      %25 = vector.broadcast %24 : vector<8x1xi32> to vector<8x512xi32>
      %26 = arith.cmpi eq, %21, %25 : vector<8x512xi32>
      %c0_i32_11 = arith.constant 0 : i32
      %27 = vector.broadcast %c0_i32_11 : i32 to vector<8x1xi32>
      %28 = arith.cmpi sge, %20, %27 : vector<8x1xi32>
      %29 = vector.broadcast %28 : vector<8x1xi1> to vector<8x512xi1>
      %30 = arith.andi %26, %29 : vector<8x512xi1>
      %31 = arith.mulf %9, %9 : vector<8x512xf32>
      %cst_12 = arith.constant 1.000000e+00 : f32
      %32 = vector.broadcast %cst_12 : f32 to vector<8x512xf32>
      %33 = arith.subf %32, %31 : vector<8x512xf32>
      %cst_13 = arith.constant 0.000000e+00 : f32
      %cst_14 = arith.constant 1.000000e+00 : f32
      %34 = vector.broadcast %cst_13 : f32 to vector<8x512xf32>
      %35 = arith.maximumf %34, %33 : vector<8x512xf32>
      %36 = vector.broadcast %cst_14 : f32 to vector<8x512xf32>
      %37 = arith.minimumf %36, %35 : vector<8x512xf32>
      %38 = math.sqrt %37 : vector<8x512xf32>
      %cst_15 = arith.constant 0.87758255 : f32
      %39 = vector.broadcast %cst_15 : f32 to vector<8x512xf32>
      %40 = arith.mulf %9, %39 : vector<8x512xf32>
      %cst_16 = arith.constant 0.47942555 : f32
      %41 = vector.broadcast %cst_16 : f32 to vector<8x512xf32>
      %42 = arith.mulf %38, %41 : vector<8x512xf32>
      %43 = arith.subf %40, %42 : vector<8x512xf32>
      %44 = arith.select %30, %43, %9 : vector<8x512xi1>, vector<8x512xf32>
      %cst_17 = arith.constant 6.400000e+01 : f32
      %45 = vector.broadcast %cst_17 : f32 to vector<8x512xf32>
      %46 = arith.mulf %44, %45 : vector<8x512xf32>
      %c0_18 = arith.constant 0 : index
      %c0_19 = arith.constant 0 : index
      %47 = vector.load %arg7[%c0_18, %c0_19] : memref<8x512xf32, #tpu.memory_space<vmem>>, vector<8x512xf32>
      tpu.vector_store %arg7[%c0_18, %c0_19], %46 {strides = array<i32>} : memref<8x512xf32, #tpu.memory_space<vmem>>, vector<8x512xf32>,
    } else {
    }
    return
  }
  func.func @transform_0(%arg0: i32, %arg1: i32, %arg2: memref<1xi32, #tpu.memory_space<smem>>) -> (i32, i32) {
    %c0_i32 = arith.constant 0 : i32
    %c0_i32_0 = arith.constant 0 : i32
    return %arg0, %c0_i32 : i32, i32
  }
  func.func @transform_1(%arg0: i32, %arg1: i32, %arg2: memref<1xi32, #tpu.memory_space<smem>>) -> (i32, i32) {
    %c0_i32 = arith.constant 0 : i32
    %c0_i32_0 = arith.constant 0 : i32
    return %arg0, %c0_i32 : i32, i32
  }
  func.func @transform_2(%arg0: i32, %arg1: i32, %arg2: memref<1xi32, #tpu.memory_space<smem>>) -> (i32, i32) {
    %c0_i32 = arith.constant 0 : i32
    %c0_i32_0 = arith.constant 0 : i32
    return %arg1, %c0_i32 : i32, i32
  }
  func.func @transform_3(%arg0: i32, %arg1: i32, %arg2: memref<1xi32, #tpu.memory_space<smem>>) -> (i32, i32) {
    %c0_i32 = arith.constant 0 : i32
    %c0_i32_0 = arith.constant 0 : i32
    return %c0_i32, %arg1 : i32, i32
  }
  func.func @transform_4(%arg0: i32, %arg1: i32, %arg2: memref<1xi32, #tpu.memory_space<smem>>) -> (i32, i32) {
    %c0_i32 = arith.constant 0 : i32
    return %arg0, %arg1 : i32, i32
  }
}

</mosaic_0001>

<bundles_post_ra>
// kernel: tpu_custom_call.1
= control target key start
LH: loop header
LB: loop body
LE: loop exit
PB: predicated region body
PF: predicated region fallthrough
CT: control target
= control target key end

     0   :  { %11 = vsyncpa [#allocation5], 0  ;;  %s785_s0 = inlined_call_operand.<no memory space> [shape: s32[1], index: 0, kind: input, shape index: {}]   ;;  %s786_s1 = inlined_call_operand.vmem [shape: s32[8,1], index: 1, kind: input, shape index: {}]   ;;  %s787_s2 = inlined_call_operand.vmem [shape: bf16[8,128], index: 2, kind: input, shape index: {}]   ;;  %s788_s3 = inlined_call_operand.hbm [shape: bf16[512,128], index: 3, kind: input, shape index: {}]   ;;  %s789_s4 = inlined_call_operand.vmem [shape: f32[1,512], index: 4, kind: input, shape index: {}]   ;;  %s790_s5 = inlined_call_operand.hbm [shape: f32[8,512], index: 5, kind: output, shape index: {}]  }
   0x1   :  { %12 = vsyncpa [#allocation6], 0  ;;  %s699_s18 = smov [#allocation4]  }
   0x2   :  { %s22_s19 = sshll.u32 %s699_s18, 4  ;;  %s23_s19 = int_to_ptr.vmem [resolvable:$true] %s22_s19 }
   0x3   :  { %s663_s20 = scalar_lea.vmem %s23_s19, 4096  ;;  %p668_p1 = scmp.lt.s32.totalorder %s23_s19, %s23_s19 }
   0x4   :  { %p664_p0 = scmp.ne.s32.totalorder %s23_s19, %s663_s20  ;;  %p669_p2 = scmp.lt.s32.totalorder %s663_s20, %s663_s20 }
   0x6   :  { %p670_p3 = por %p669_p2, %p668_p1 }
   0x8   :  { %p671_p4 = pnand %p670_p3, %p664_p0 }
   0xa   :  { %674 = shalt.err (!%p671_p4)
}
   0xb   :  { %s700_s21 = smov 64   ;;  %s701_s22 = smov 4  }
   0xc   :  { %28 = dma.hbm_to_vmem [thread:$0]  %s788_s3, 4096, %s23_s19, [#allocation5], %s700_s21, %s700_s21, %s701_s22  }
   0xd   :  { %695 = dma.done.wait [#allocation5], 4096  }
   0xe   :  { %696 = vsyncadd [#allocation5], 4294963200  ;;  %v614_v0 = vld [vmem:[#allocation4 + $0x78] sm:$0xff]   ;;  %v618_v4 = vld [vmem:[#allocation4 + $0x70] sm:$0xff]   ;;  %v376_v33 = vlaneseq  ;;  %p571_p5 = scmp.gt.s32.totalorder %s785_s0, 0 }
   0xf   :  { %v615_v1 = vld [vmem:[#allocation4 + $0xf8] sm:$0xff]   ;;  %573 = vmatprep.subr.bf16.mxu0 %v614_v0  ;;  %v619_v5 = vld [vmem:[#allocation4 + $0xf0] sm:$0xff]   ;;  %v622_v8 = vld [vmem:[#allocation4 + $0x68] sm:$0xff]  }
  0x10   :  { %v616_v2 = vld [vmem:[#allocation4 + $0x38] sm:$0xff]   ;;  %591 = vmatprep.subr.bf16.mxu1 %v615_v1  ;;  %v620_v6 = vld [vmem:[#allocation4 + $0x30] sm:$0xff]   ;;  %v623_v9 = vld [vmem:[#allocation4 + $0xe8] sm:$0xff]   ;;  %v377_v34 = vshrl.u32 %v376_v33, 7 }
  0x11   :  { %v617_v3 = vld [vmem:[#allocation4 + $0xb8] sm:$0xff]   ;;  %574 = vmatpush3.bf16.xpose.msra.mxu0 %v616_v2  ;;  %v621_v7 = vld [vmem:[#allocation4 + $0xb0] sm:$0xff]   ;;  %v624_v10 = vld [vmem:[#allocation4 + $0x28] sm:$0xff]  }
  0x12   :  { %592 = vmatpush3.bf16.xpose.msra.mxu1 %v617_v3  ;;  %575 = vmatprep.subr.bf16.mxu0 %v618_v4  ;;  %v625_v11 = vld [vmem:[#allocation4 + $0xa8] sm:$0xff]   ;;  %v626_v12 = vld [vmem:[#allocation4 + $0x60] sm:$0xff]   ;;  %v630_v16 = vld [vmem:[#allocation4 + $0x58] sm:$0xff]   ;;  %v378_v35 = vsub.s32 0, %v377_v34  ;;  %v386_v37 = vsub.s32 2, %v377_v34  ;;  %v382_v38 = vsub.s32 1, %v377_v34 }
  0x13   :  { %593 = vmatprep.subr.bf16.mxu1 %v619_v5  ;;  %v627_v13 = vld [vmem:[#allocation4 + $0xe0] sm:$0xff]   ;;  %v631_v17 = vld [vmem:[#allocation4 + $0xd8] sm:$0xff]   ;;  %v634_v21 = vld [vmem:[#allocation4 + $0x50] sm:$0xff]   ;;  %v390_v39 = vsub.s32 3, %v377_v34 }
  0x14   :  { %v628_v14 = vld [vmem:[#allocation4 + $0x20] sm:$0xff]   ;;  %v632_v18 = vld [vmem:[#allocation4 + $0x18] sm:$0xff]   ;;  %v635_v22 = vld [vmem:[#allocation4 + $0xd0] sm:$0xff]  }
  0x15   :  { %v629_v15 = vld [vmem:[#allocation4 + $0xa0] sm:$0xff]   ;;  %v633_v20 = vld [vmem:[#allocation4 + $0x98] sm:$0xff]   ;;  %v636_v23 = vld [vmem:[#allocation4 + $0x10] sm:$0xff]  }
  0x16   :  { %v35_v19 = vld [vmem:[%s787_s2] sm:$0xf]  ;;  %v637_v24 = vld [vmem:[#allocation4 + $0x90] sm:$0xff]   ;;  %v638_v25 = vld [vmem:[#allocation4 + $0x48] sm:$0xff]  }
  0x17   :  { %589 = vmatprep.mubr.bf16.mxu0 %v35_v19  ;;  %607 = vmatprep.mubr.bf16.mxu1 %v35_v19  ;;  %v639_v26 = vld [vmem:[#allocation4 + $0xc8] sm:$0xff]   ;;  %v642_v29 = vld [vmem:[#allocation4 + $0x40] sm:$0xff]  }
  0x18   :  { %v640_v27 = vld [vmem:[#allocation4 + $0x8] sm:$0xff]   ;;  %v643_v30 = vld [vmem:[#allocation4 + $0xc0] sm:$0xff]  }
  0x19   :  { %576 = vmatpush3.bf16.xpose.msra.mxu0 %v620_v6  ;;  %v641_v28 = vld [vmem:[#allocation4 + $0x88] sm:$0xff]   ;;  %v644_v31 = vld [vmem:[#allocation4] sm:$0xff]  }
  0x1a   :  { %594 = vmatpush3.bf16.xpose.msra.mxu1 %v621_v7  ;;  %577 = vmatprep.subr.bf16.mxu0 %v622_v8  ;;  %v645_v32 = vld [vmem:[#allocation4 + $0x80] sm:$0xff]  }
  0x1b   :  { %595 = vmatprep.subr.bf16.mxu1 %v623_v9  ;;  %v374_v36 = vld [vmem:[%s789_s4] sm:$0xf] }
  0x1c   :  { %v379_v40 = vrot.slane %v374_v36, %v378_v35  ;;  %v387_v41 = vrot.slane %v374_v36, %v386_v37  ;;  %v383_v42 = vrot.slane %v374_v36, %v382_v38  ;;  %v391_v44 = vrot.slane %v374_v36, %v390_v39 }
  0x21   :  { %578 = vmatpush3.bf16.xpose.msra.mxu0 %v624_v10 }
  0x22   :  { %596 = vmatpush3.bf16.xpose.msra.mxu1 %v625_v11  ;;  %579 = vmatprep.subr.bf16.mxu0 %v626_v12 }
  0x23   :  { %597 = vmatprep.subr.bf16.mxu1 %v627_v13 }
  0x29   :  { %580 = vmatpush3.bf16.xpose.msra.mxu0 %v628_v14 }
  0x2a   :  { %598 = vmatpush3.bf16.xpose.msra.mxu1 %v629_v15  ;;  %581 = vmatprep.subr.bf16.mxu0 %v630_v16 }
  0x2b   :  { %599 = vmatprep.subr.bf16.mxu1 %v631_v17 }
  0x31   :  { %582 = vmatpush3.bf16.xpose.msra.mxu0 %v632_v18 }
  0x32   :  { %600 = vmatpush3.bf16.xpose.msra.mxu1 %v633_v20  ;;  %583 = vmatprep.subr.bf16.mxu0 %v634_v21 }
  0x33   :  { %601 = vmatprep.subr.bf16.mxu1 %v635_v22 }
  0x39   :  { %584 = vmatpush3.bf16.xpose.msra.mxu0 %v636_v23 }
  0x3a   :  { %602 = vmatpush3.bf16.xpose.msra.mxu1 %v637_v24  ;;  %585 = vmatprep.subr.bf16.mxu0 %v638_v25 }
  0x3b   :  { %603 = vmatprep.subr.bf16.mxu1 %v639_v26 }
  0x41   :  { %586 = vmatpush3.bf16.xpose.msra.mxu0 %v640_v27 }
  0x42   :  { %604 = vmatpush3.bf16.xpose.msra.mxu1 %v641_v28  ;;  %587 = vmatprep.subr.bf16.mxu0 %v642_v29 }
  0x43   :  { %605 = vmatprep.subr.bf16.mxu1 %v643_v30 }
  0x49   :  { %588 = vmatpush3.bf16.xpose.msra.mxu0 %v644_v31 }
  0x4a   :  { %606 = vmatpush3.bf16.xpose.msra.mxu1 %v645_v32 }
  0x50   :  { %590 = vmatmul.mubr.bf16.vlgmr.msra.gmra.mxu0 %v35_v19 }
  0x51   :  { %608 = vmatmul.mubr.bf16.vlgmr.msra.gmra.mxu1 %v35_v19 }
 0x110   :  { %v326_v43 = vpop.f32.mrf.mxu0 }
 0x111   :  { %v396_v45 = vmul.f32 %v379_v40, %v326_v43  ;;  %v367_v46 = vpop.f32.mrf.mxu1 }
 0x112   :  { %v398_v47 = vmul.f32 %v387_v41, %v367_v46  ;;  %v328_v48 = vpop.f32.mrf.mxu0 }
 0x113   :  { %v744_v49 = vclamps-f32 %v396_v45, 1.0  ;;  %v397_v50 = vmul.f32 %v383_v42, %v328_v48  ;;  %v369_v51 = vpop.f32.mrf.mxu1  ;;  %414 = sbr.rel (%p571_p5) target bundleno = 284 (0x11c), region = 25 }
 0x114   :  { %v746_v52 = vclamps-f32 %v398_v47, 1.0  ;;  %v399_v53 = vmul.f32 %v391_v44, %v369_v51  ;;  %v330_v54 = vpop.f32.mrf.mxu0 }
 0x115   :  { %v748_v55 = vclamps-f32 %v397_v50, 1.0  ;;  %v371_v56 = vpop.f32.mrf.mxu1 }
 0x116   :  { %v750_v57 = vclamps-f32 %v399_v53, 1.0  ;;  %v331_v58 = vpop.f32.mrf.mxu0 }
 0x117   :  { %v372_v59 = vpop.f32.mrf.mxu1 }
 0x118   :  { %v415_v60 = vmul.f32 64.0, %v744_v49  ;;  %v416_v61 = vmul.f32 64.0, %v748_v55  ;;  %v417_v62 = vmul.f32 64.0, %v746_v52  ;;  %v418_v63 = vmul.f32 64.0, %v750_v57 }
 0x11a   :  { %419 = vst [vmem:[#allocation7] sm:$0xff] %v415_v60  ;;  %420 = vst [vmem:[#allocation7 + $0x8] sm:$0xff] %v416_v61 }
 0x11b   :  { %421 = vst [vmem:[#allocation7 + $0x10] sm:$0xff] %v417_v62  ;;  %422 = vst [vmem:[#allocation7 + $0x18] sm:$0xff] %v418_v63 }
 0x11c PF:  { %p572_p6 = scmp.le.s32.totalorder %s785_s0, 0 }
 0x11e   :  { %425 = sbr.rel (%p572_p6) target bundleno = 430 (0x1ae), region = 29 }
 0x123   :  { %v426_v0 = vld [vmem:[%s786_s1] sm:$0xff]  ;;  %v702_v1 = vmov 0   ;;  %v452_v3 = vmul.f32 %v744_v49, %v744_v49  ;;  %v453_v4 = vmul.f32 %v748_v55, %v748_v55  ;;  %v454_v5 = vmul.f32 %v746_v52, %v746_v52 }
 0x124   :  { %646 = vset.pattern.permute.xlu0 %v702_v1  ;;  %vm442_vm0 = vcmp.ge.s32.totalorder %v426_v0, 0  ;;  %v455_v6 = vmul.f32 %v750_v57, %v750_v57  ;;  %v428_v38 = vand.u32 127, %v376_v33  ;;  %v496_v41 = vmul.f32 0.87758255, %v744_v49 }
 0x125   :  { %436 = vperm.xlu0 %646, %v426_v0   ;;  %v443_v2 = vsel %vm442_vm0, 1, %v702_v1  ;;  %v456_v7 = vsub.f32 1.0, %v452_v3  ;;  %v457_v8 = vsub.f32 1.0, %v453_v4  ;;  %v458_v9 = vsub.f32 1.0, %v454_v5 }
 0x126   :  { %v459_v10 = vsub.f32 1.0, %v455_v6  ;;  %v497_v44 = vmul.f32 0.87758255, %v748_v55  ;;  %v498_v46 = vmul.f32 0.87758255, %v746_v52  ;;  %v429_v48 = vadd.s32 128, %v428_v38 }
 0x127   :  { %v460_v11 = vmax.f32 %v456_v7, 0.0  ;;  %v461_v12 = vmax.f32 %v457_v8, 0.0  ;;  %v462_v13 = vmax.f32 %v458_v9, 0.0  ;;  %v499_v50 = vmul.f32 0.87758255, %v750_v57 }
 0x128   :  { %v463_v14 = vmax.f32 %v459_v10, 0.0  ;;  %v430_v53 = vadd.s32 256, %v428_v38  ;;  %v431_v56 = vadd.s32 384, %v428_v38 }
 0x129   :  { %445 = vperm.xlu0 %646, %v443_v2   ;;  %v464_v15 = vmin.f32 %v460_v11, 1.0  ;;  %v465_v16 = vmin.f32 %v461_v12, 1.0  ;;  %v466_v17 = vmin.f32 %v462_v13, 1.0 }
 0x12a   :  { %v467_v18 = vmin.f32 %v463_v14, 1.0 }
 0x12b   :  { %647 = vrsqrt.f32 %v464_v15  ;;  %vm470_vm1 = vcmp.eq.f32.partialorder %v464_v15, inf  ;;  %vm477_vm2 = vcmp.eq.f32.partialorder %v465_v16, inf  ;;  %v473_v26 = vand.u32 2147483648, %v464_v15 }
 0x12c   :  { %649 = vrsqrt.f32 %v465_v16  ;;  %vm484_vm3 = vcmp.eq.f32.partialorder %v466_v17, inf  ;;  %vm472_vm4 = vcmp.eq.f32.partialorder %v464_v15, 0.0  ;;  %v480_v29 = vand.u32 2147483648, %v465_v16 }
 0x12d   :  { %651 = vrsqrt.f32 %v466_v17  ;;  %vm491_vm5 = vcmp.eq.f32.partialorder %v467_v18, inf  ;;  %vm479_vm6 = vcmp.eq.f32.partialorder %v465_v16, 0.0  ;;  %v487_v31 = vand.u32 2147483648, %v466_v17 }
 0x12e   :  { %653 = vrsqrt.f32 %v467_v18  ;;  %vm486_vm7 = vcmp.eq.f32.partialorder %v466_v17, 0.0  ;;  %v494_v34 = vand.u32 2147483648, %v467_v18  ;;  %vm493_vm8 = vcmp.eq.f32.partialorder %v467_v18, 0.0 }
 0x138   :  { %v648_v19 = vpop.eup %647 }
 0x139   :  { %v650_v20 = vpop.eup %649  ;;  %v469_v23 = vmul.f32 %v648_v19, %v464_v15 }
 0x13a   :  { %v652_v21 = vpop.eup %651  ;;  %v476_v24 = vmul.f32 %v650_v20, %v465_v16 }
 0x13b   :  { %v654_v22 = vpop.eup %653  ;;  %v483_v25 = vmul.f32 %v652_v21, %v466_v17  ;;  %v471_v28 = vsel %vm470_vm1, %v464_v15, %v469_v23 }
 0x13c   :  { %v490_v27 = vmul.f32 %v654_v22, %v467_v18  ;;  %v478_v30 = vsel %vm477_vm2, %v465_v16, %v476_v24  ;;  %v474_v35 = vsel %vm472_vm4, %v473_v26, %v471_v28 }
 0x13d   :  { %v485_v32 = vsel %vm484_vm3, %v466_v17, %v483_v25  ;;  %v481_v37 = vsel %vm479_vm6, %v480_v29, %v478_v30  ;;  %v500_v42 = vmul.f32 0.47942555, %v474_v35 }
 0x13e   :  { %v492_v36 = vsel %vm491_vm5, %v467_v18, %v490_v27  ;;  %v488_v39 = vsel %vm486_vm7, %v487_v31, %v485_v32  ;;  %v501_v45 = vmul.f32 0.47942555, %v481_v37 }
 0x13f   :  { %v495_v40 = vsel %vm493_vm8, %v494_v34, %v492_v36  ;;  %v502_v47 = vmul.f32 0.47942555, %v488_v39  ;;  %v504_v54 = vsub.f32 %v496_v41, %v500_v42 }
 0x140   :  { %v503_v51 = vmul.f32 0.47942555, %v495_v40  ;;  %v505_v33 = vsub.f32 %v497_v44, %v501_v45 }
 0x141   :  { %v506_v59 = vsub.f32 %v498_v46, %v502_v47 }
 0x142   :  { %v507_v60 = vsub.f32 %v499_v50, %v503_v51 }
 0x1a0   :  { %v437_v43 = vpop.permute.xlu0 %436 }
 0x1a1   :  { %vm438_vm9 = vcmp.eq.s32.totalorder %v428_v38, %v437_v43  ;;  %vm439_vm11 = vcmp.eq.s32.totalorder %v429_v48, %v437_v43  ;;  %vm440_vm13 = vcmp.eq.s32.totalorder %v430_v53, %v437_v43  ;;  %vm441_vm15 = vcmp.eq.s32.totalorder %v431_v56, %v437_v43 }
 0x1a4   :  { %v446_v58 = vpop.permute.xlu0 %445 }
 0x1a5   :  { %vm447_vm10 = vcmp.eq.s32.totalorder %v446_v58, 1 }
 0x1a6   :  { %vm448_vm12 = vmand %vm438_vm9, %vm447_vm10 }
 0x1a7   :  { %vm449_vm14 = vmand %vm439_vm11, %vm447_vm10  ;;  %v508_v61 = vsel %vm448_vm12, %v504_v54, %v744_v49 }
 0x1a8   :  { %vm450_vm0 = vmand %vm440_vm13, %vm447_vm10  ;;  %v509_v62 = vsel %vm449_vm14, %v505_v33, %v748_v55  ;;  %v512_v63 = vmul.f32 64.0, %v508_v61 }
 0x1a9   :  { %vm451_vm1 = vmand %vm441_vm15, %vm447_vm10  ;;  %v510_v0 = vsel %vm450_vm0, %v506_v59, %v746_v52  ;;  %v513_v1 = vmul.f32 64.0, %v509_v62 }
 0x1aa   :  { %v511_v2 = vsel %vm451_vm1, %v507_v60, %v750_v57  ;;  %v514_v3 = vmul.f32 64.0, %v510_v0  ;;  %516 = vst [vmem:[#allocation7] sm:$0xff] %v512_v63 }
 0x1ab   :  { %v515_v4 = vmul.f32 64.0, %v511_v2  ;;  %517 = vst [vmem:[#allocation7 + $0x8] sm:$0xff] %v513_v1 }
 0x1ac   :  { %518 = vst [vmem:[#allocation7 + $0x10] sm:$0xff] %v514_v3 }
 0x1ad   :  { %519 = vst [vmem:[#allocation7 + $0x18] sm:$0xff] %v515_v4 }
 0x1ae PF:  { %s703_s0 = smov [#allocation7]  }
 0x1af   :  { %s526_s1 = sshll.u32 %s703_s0, 4  ;;  %s527_s1 = int_to_ptr.vmem [resolvable:$true] %s526_s1 }
 0x1b0   :  { %s675_s7 = scalar_lea.vmem %s527_s1, 512  ;;  %p680_p8 = scmp.lt.s32.totalorder %s527_s1, %s527_s1 }
 0x1b1   :  { %p676_p7 = scmp.ne.s32.totalorder %s527_s1, %s675_s7  ;;  %p681_p9 = scmp.lt.s32.totalorder %s675_s7, %s675_s7 }
 0x1b3   :  { %p682_p10 = por %p681_p9, %p680_p8 }
 0x1b5   :  { %p683_p11 = pnand %p682_p10, %p676_p7 }
 0x1b7   :  { %686 = shalt.err (!%p683_p11)
}
 0x1b8   :  { %529 = dma.vmem_to_hbm [thread:$0]  %s527_s1, 512, %s790_s5, [#allocation6]  }
 0x1b9   :  { %697 = dma.done.wait [#allocation6], 512  }
 0x1ba   :  { %698 = vsyncadd [#allocation6], 4294966784 }
 0x1bb   :  { %533 = vsyncpa [#allocation5], 1 }
 0x1bc   :  { %534 = vsyncpa [#allocation6], 1 }

</bundles_post_ra>
